<compile_context>
chip_gen: v7x
topology: tpu7x:2x2x1
jax: 0.10.0
libtpu: 0.0.40
codegen_flags: <defaults>
</compile_context>

<pallas_src>
import jax
import jax.numpy as jnp
from jax.experimental import pallas as pl
from jax.experimental.pallas import tpu as pltpu


def fused_affine_kernel(x_ref, p_ref, o_ref):
    # x_ref: (B, 2) f32
    # p_ref: (3, 4) f32  -- rows 0..1 = fused weight W (2, 4), row 2 = fused bias b (1, 4)
    # o_ref: (B, 4) f32
    x = x_ref[...]          # (B, 2)
    p = p_ref[...]          # (3, 4)

    w_row0 = p[0:1, :]      # (1, 4)
    w_row1 = p[1:2, :]      # (1, 4)
    bias = p[2:3, :]        # (1, 4)

    # VPU broadcasted FMAs: (B,1)*(1,4) + (B,1)*(1,4) + (1,4) -> (B,4)
    out = x[:, 0:1] * w_row0 + x[:, 1:2] * w_row1 + bias
    o_ref[...] = out.astype(o_ref.dtype)


def mlp_forward(x, w1, b1, w2, b2):
    """Forward pass equivalent to fc2(fc1(x) + zeros_like(fc1(x))).

    Weights are PyTorch-style (out_features, in_features); biases are (1, out).
    The two linears are fused (once, in plain JAX) into a single affine map.
    """
    # Fuse:  (x @ w1.T + b1) @ w2.T + b2  ==  x @ (w1.T @ w2.T) + (b1 @ w2.T + b2)
    W_fused = w1.T @ w2.T                 # (2, 4)
    b_fused = b1 @ w2.T + b2              # (1, 4)
    params = jnp.concatenate([W_fused, b_fused], axis=0).astype(jnp.float32)  # (3, 4)

    B = x.shape[0]
    out_features = w2.shape[0]

    return pl.pallas_call(
        fused_affine_kernel,
        out_shape=jax.ShapeDtypeStruct((B, out_features), jnp.float32),
        # No grid: single invocation, full arrays resident in VMEM.
        in_specs=[
            pl.BlockSpec(memory_space=pltpu.MemorySpace.VMEM),
            pl.BlockSpec(memory_space=pltpu.MemorySpace.VMEM),
        ],
        out_specs=pl.BlockSpec(memory_space=pltpu.MemorySpace.VMEM),
    )(x.astype(jnp.float32), params)


if __name__ == "__main__":
    key = jax.random.PRNGKey(0)
    k_x, k_w1, k_b1, k_w2, k_b2 = jax.random.split(key, 5)

    # Input matching the module's expected shape (1, 2)
    x = jax.random.normal(k_x, (1, 2), dtype=jnp.float32)

    # Deterministic parameter init (PyTorch-style shapes: (out, in))
    w1 = jax.random.normal(k_w1, (8, 2), dtype=jnp.float32) * 0.5
    b1 = jax.random.normal(k_b1, (1, 8), dtype=jnp.float32) * 0.1
    w2 = jax.random.normal(k_w2, (4, 8), dtype=jnp.float32) * 0.5
    b2 = jax.random.normal(k_b2, (1, 4), dtype=jnp.float32) * 0.1

    out = mlp_forward(x, w1, b1, w2, b2)
    jax.block_until_ready(out)

    # Reference check in plain JAX (unfused order; 1e-5 tol covers the
    # slight f32 summation-order difference from the fusion).
    ref = (x @ w1.T + b1) @ w2.T + b2
    assert out.shape == (1, 4)
    assert jnp.allclose(out, ref, atol=1e-5, rtol=1e-5)

    print("KERNEL_OK")
</pallas_src>

<mosaic_0001>
module attributes {stable_mosaic.version = 11 : i64} {
  func.func @fused_affine_kernel(%arg0: memref<1x2xf32, #tpu.memory_space<vmem>>, %arg1: memref<3x4xf32, #tpu.memory_space<vmem>>, %arg2: memref<1x4xf32, #tpu.memory_space<vmem>>) attributes {dimension_semantics = [], scalar_prefetch = 0 : i64, scratch_operands = 0 : i64, tpu.core_type = #tpu.core_type<tc>} {
    %c0 = arith.constant 0 : index
    %c0_0 = arith.constant 0 : index
    %0 = vector.load %arg0[%c0, %c0_0] : memref<1x2xf32, #tpu.memory_space<vmem>>, vector<1x2xf32>
    %c0_1 = arith.constant 0 : index
    %c0_2 = arith.constant 0 : index
    %1 = vector.load %arg1[%c0_1, %c0_2] : memref<3x4xf32, #tpu.memory_space<vmem>>, vector<3x4xf32>
    %2 = vector.extract_strided_slice %1 {offsets = [0, 0], sizes = [1, 4], strides = [1, 1]} : vector<3x4xf32> to vector<1x4xf32>
    %3 = vector.extract_strided_slice %1 {offsets = [1, 0], sizes = [1, 4], strides = [1, 1]} : vector<3x4xf32> to vector<1x4xf32>
    %4 = vector.extract_strided_slice %1 {offsets = [2, 0], sizes = [1, 4], strides = [1, 1]} : vector<3x4xf32> to vector<1x4xf32>
    %5 = vector.extract_strided_slice %0 {offsets = [0, 0], sizes = [1, 1], strides = [1, 1]} : vector<1x2xf32> to vector<1x1xf32>
    %6 = vector.broadcast %5 : vector<1x1xf32> to vector<1x4xf32>
    %7 = arith.mulf %6, %2 : vector<1x4xf32>
    %8 = vector.extract_strided_slice %0 {offsets = [0, 1], sizes = [1, 1], strides = [1, 1]} : vector<1x2xf32> to vector<1x1xf32>
    %9 = vector.broadcast %8 : vector<1x1xf32> to vector<1x4xf32>
    %10 = arith.mulf %9, %3 : vector<1x4xf32>
    %11 = arith.addf %7, %10 : vector<1x4xf32>
    %12 = arith.addf %11, %4 : vector<1x4xf32>
    %c0_3 = arith.constant 0 : index
    %c0_4 = arith.constant 0 : index
    %13 = vector.load %arg2[%c0_3, %c0_4] : memref<1x4xf32, #tpu.memory_space<vmem>>, vector<1x4xf32>
    tpu.vector_store %arg2[%c0_3, %c0_4], %12 {strides = array<i32>} : memref<1x4xf32, #tpu.memory_space<vmem>>, vector<1x4xf32>,
    return
  }
}

</mosaic_0001>

<bundles_post_ra>
// kernel: tpu_custom_call.1
= control target key start
LH: loop header
LB: loop body
LE: loop exit
PB: predicated region body
PF: predicated region fallthrough
CT: control target
= control target key end

     0   :  { %7 = vsyncpa [#allocation3], 0  ;;  %s219_s0 = inlined_call_operand.hbm [shape: f32[1,2], index: 0, kind: input, shape index: {}]   ;;  %s220_s1 = inlined_call_operand.hbm [shape: f32[3,4], index: 1, kind: input, shape index: {}]   ;;  %s221_s2 = inlined_call_operand.hbm [shape: f32[1,4], index: 2, kind: output, shape index: {}]  }
   0x1   :  { %8 = vsyncpa [#allocation6], 0 }
   0x2   :  { %9 = vsyncpa [#allocation4], 0  ;;  %s163_s9 = smov [#allocation2]   ;;  %s164_s11 = smov [#allocation5]  }
   0x3   :  { %s16_s10 = sshll.u32 %s163_s9, 4  ;;  %s26_s12 = sshll.u32 %s164_s11, 4  ;;  %s17_s10 = int_to_ptr.vmem [resolvable:$true] %s16_s10  ;;  %s27_s12 = int_to_ptr.vmem [resolvable:$true] %s26_s12 }
   0x4   :  { %s91_s15 = scalar_lea.hbm %s219_s0, 16 }
   0x5   :  { %p92_p0 = scmp.ne.s32.totalorder %s219_s0, %s91_s15  ;;  %p95_p1 = scmp.lt.u32.totalorder %s91_s15, %s219_s0 }
   0x7   :  { %p97_p2 = pnand %p95_p1, %p92_p0 }
   0x9   :  { %100 = shalt.err (!%p97_p2)
}
   0xa   :  { %s101_s20 = scalar_lea.vmem %s17_s10, 16  ;;  %s105_s21 = scalar_lea.vmem %s17_s10, 32 }
   0xb   :  { %p102_p3 = scmp.ne.s32.totalorder %s17_s10, %s101_s20  ;;  %p106_p4 = scmp.lt.s32.totalorder %s17_s10, %s17_s10 }
   0xc   :  { %p107_p5 = scmp.lt.s32.totalorder %s105_s21, %s101_s20 }
   0xe   :  { %p108_p6 = por %p107_p5, %p106_p4 }
  0x10   :  { %p109_p7 = pnand %p108_p6, %p102_p3 }
  0x12   :  { %112 = shalt.err (!%p109_p7)
}
  0x13   :  { %19 = dma.hbm_to_vmem [thread:$0]  %s219_s0, 16, %s17_s10, [#allocation3]  }
  0x14   :  { %s113_s26 = scalar_lea.hbm %s220_s1, 64 }
  0x15   :  { %p114_p8 = scmp.ne.s32.totalorder %s220_s1, %s113_s26  ;;  %p117_p9 = scmp.lt.u32.totalorder %s113_s26, %s220_s1 }
  0x17   :  { %p119_p10 = pnand %p117_p9, %p114_p8 }
  0x19   :  { %122 = shalt.err (!%p119_p10)
}
  0x1a   :  { %s123_s3 = scalar_lea.vmem %s27_s12, 64  ;;  %p128_p12 = scmp.lt.s32.totalorder %s27_s12, %s27_s12 }
  0x1b   :  { %p124_p11 = scmp.ne.s32.totalorder %s27_s12, %s123_s3  ;;  %p129_p13 = scmp.lt.s32.totalorder %s123_s3, %s123_s3 }
  0x1d   :  { %p130_p0 = por %p129_p13, %p128_p12 }
  0x1f   :  { %p131_p1 = pnand %p130_p0, %p124_p11 }
  0x21   :  { %134 = shalt.err (!%p131_p1)
}
  0x22   :  { %29 = dma.hbm_to_vmem [thread:$0]  %s220_s1, 64, %s27_s12, [#allocation6]  }
  0x23   :  { %157 = dma.done.wait [#allocation3], 16  }
  0x24   :  { %158 = vsyncadd [#allocation3], 4294967280 }
  0x25   :  { %159 = dma.done.wait [#allocation6], 64  }
  0x26   :  { %160 = vsyncadd [#allocation6], 4294967232  ;;  %v165_v0 = vmov 1   ;;  %v36_v1 = vld [vmem:[#allocation2] sm:$0x1]  ;;  %v166_v2 = vmov 0   ;;  %v43_v3 = vlaneseq }
  0x27   :  { %88 = vset.pattern.permute.xlu0 %v165_v0  ;;  %v37_v7 = vld [vmem:[#allocation5] sm:$0x7]  ;;  %s167_s1 = smov [#allocation7]   ;;  %vm65_vm0 = vcmask 24576  }
  0x28   :  { %49 = vperm.xlu0 %88, %v36_v1   ;;  %v44_v4 = vshrl.u32 %v43_v3, 7  ;;  %v62_v12 = vrot.slane %v37_v7, 2  ;;  %s73_s5 = sshll.u32 %s167_s1, 4  ;;  %s74_s5 = int_to_ptr.vmem [resolvable:$true] %s73_s5 }
  0x29   :  { %s135_s6 = scalar_lea.vmem %s74_s5, 16  ;;  %s139_s7 = scalar_lea.vmem %s74_s5, 32 }
  0x2a   :  { %v45_v5 = vsub.s32 0, %v44_v4  ;;  %p136_p2 = scmp.ne.s32.totalorder %s74_s5, %s135_s6  ;;  %p140_p3 = scmp.lt.s32.totalorder %s74_s5, %s74_s5 }
  0x2b   :  { %p141_p4 = scmp.lt.s32.totalorder %s139_s7, %s135_s6 }
  0x2c   :  { %89 = vset.pattern.permute.xlu0 %v166_v2 }
  0x2d   :  { %40 = vperm.xlu0 %89, %v36_v1   ;;  %p142_p5 = por %p141_p4, %p140_p3 }
  0x2f   :  { %p143_p6 = pnand %p142_p5, %p136_p2 }
  0x31   :  { %90 = vset.pattern.permute.xlu0 %v165_v0 }
  0xa7   :  { %v50_v6 = vpop.permute.xlu0 %49 }
  0xa8   :  { %v55_v8 = vrot.slane %v50_v6, %v45_v5 }
  0xaa   :  { %v56_v9 = vmul.f32 %v55_v8, %v37_v7 }
  0xac   :  { %v41_v10 = vpop.permute.xlu0 %40  ;;  %v58_v13 = vrot.slane %v56_v9, 1 }
  0xad   :  { %v46_v11 = vrot.slane %v41_v10, %v45_v5 }
  0xaf   :  { %v47_v14 = vmul.f32 %v46_v11, %v37_v7 }
  0xb1   :  { %v60_v15 = vadd.f32 %v58_v13, %v47_v14 }
  0xb3   :  { %v64_v16 = vadd.f32 %v62_v12, %v60_v15 }
  0xb5   :  { %66 = vst.msk [vmem:[#allocation7] sm:$0x1] %vm65_vm0, %v64_v16 }
  0xb6   :  { %146 = shalt.err (!%p143_p6)
}
  0xb7   :  { %s147_s10 = scalar_lea.hbm %s221_s2, 16 }
  0xb8   :  { %p148_p7 = scmp.ne.s32.totalorder %s221_s2, %s147_s10  ;;  %p151_p8 = scmp.lt.u32.totalorder %s147_s10, %s221_s2 }
  0xba   :  { %p153_p9 = pnand %p151_p8, %p148_p7 }
  0xbc   :  { %156 = shalt.err (!%p153_p9)
}
  0xbd   :  { %76 = dma.vmem_to_hbm [thread:$0]  %s74_s5, 16, %s221_s2, [#allocation4]  }
  0xbe   :  { %161 = dma.done.wait [#allocation4], 16  }
  0xbf   :  { %162 = vsyncadd [#allocation4], 4294967280 }
  0xc0   :  { %80 = vsyncpa [#allocation3], 1 }
  0xc1   :  { %81 = vsyncpa [#allocation6], 1 }
  0xc2   :  { %82 = vsyncpa [#allocation4], 1 }

</bundles_post_ra>
